<compile_context>
chip_gen: v7x
topology: tpu7x:2x2x1
jax: 0.10.0
libtpu: 0.0.40
codegen_flags: <defaults>
</compile_context>

<pallas_src>
import functools

import jax
import jax.numpy as jnp
import numpy as np
from jax.experimental import pallas as pl
from jax.experimental.pallas import tpu as pltpu


# --------------------------------------------------------------------------- #
# Fused kernel
# --------------------------------------------------------------------------- #
def _avwgcn_kernel(sup_ref, x_ref, emb_rep_ref, w_ref, bias_ref, out_ref,
                   pp_ref, zacc_ref, *, compute_dtype):
    """Fused AVWGCN forward for one batch-column tile.

    grid = (B // tb, cheb_k), dimension_semantics = ("parallel", "arbitrary").
    The k axis MUST stay "arbitrary": the Chebyshev recurrence and the Z
    accumulator are carried in VMEM scratch across k.

      sup_ref     : [N, N]        support matrix (compute_dtype), resident
      x_ref       : [N, tb*I]     input features, columns ordered (b, i), f32
      emb_rep_ref : [N, D*O]      emb[n, d] repeated O times (cols (d, o)), f32
      w_ref       : [1, I, D*O]   weights_pool slice for this k, rows i, cols (d, o)
      bias_ref    : [N, O]        precomputed emb @ bias_pool, f32
      out_ref     : [N, tb*O]     lane-dense output slab, columns (b, o), f32
      pp_ref      : [2, N, tb*I]  ping-pong Chebyshev state (f32)
      zacc_ref    : [tb, N, D*O]  per-batch-element Z accumulator (f32)
    """
    k = pl.program_id(1)
    last_k = pl.num_programs(1) - 1

    dim_in = w_ref.shape[1]
    d_times_o = w_ref.shape[2]
    dim_out = bias_ref.shape[1]
    embed_dim = d_times_o // dim_out
    tb = x_ref.shape[1] // dim_in

    f32 = jnp.float32
    slot = k % 2

    # ---- Chebyshev recurrence, f32 state in a 2-slot ping-pong buffer -------
    @pl.when(k == 0)
    def _():
        zacc_ref[...] = jnp.zeros_like(zacc_ref)
        pp_ref[0] = x_ref[...]                               # T_0(S) @ x = x

    @pl.when(k == 1)
    def _():
        prev = pp_ref[0]
        pp_ref[1] = jnp.dot(sup_ref[...], prev.astype(compute_dtype),
                            preferred_element_type=f32)

    @pl.when(k >= 2)
    def _():
        prev = pp_ref[1 - slot]                              # x_{k-1}
        prev2 = pp_ref[slot]                                 # x_{k-2}, overwritten in place
        pp_ref[slot] = (2.0 * jnp.dot(sup_ref[...], prev.astype(compute_dtype),
                                      preferred_element_type=f32)
                        - prev2)

    # ---- contract the fresh x_g[k] slab with the k-th weight slice (MXU) ----
    cur = pp_ref[slot].astype(compute_dtype)                 # [N, tb*I]
    wk = w_ref[0]                                            # [I, D*O]
    for b in range(tb):                                      # static unroll (tb small)
        xb = cur[:, b * dim_in:(b + 1) * dim_in]             # [N, I]  static lane slice
        zacc_ref[b] += jnp.dot(xb, wk, preferred_element_type=f32)

    # ---- finalize: emb-weighted reduction over d, bias add, one full store --
    @pl.when(k == last_k)
    def _():
        emb_rep = emb_rep_ref[...]                           # [N, D*O]
        bias = bias_ref[...]                                 # [N, O]
        cols = []
        for b in range(tb):
            zb = zacc_ref[b] * emb_rep                       # [N, D*O]   (VPU)
            acc = zb[:, 0:dim_out]
            for d in range(1, embed_dim):
                acc = acc + zb[:, d * dim_out:(d + 1) * dim_out]
            cols.append(acc + bias)
        out_ref[...] = jnp.concatenate(cols, axis=1).astype(out_ref.dtype)


# --------------------------------------------------------------------------- #
# Wrapper
# --------------------------------------------------------------------------- #
def _pick_batch_tile(batch, dim_in, dim_out, target):
    """Largest divisor tb of `batch` with tb <= target whose x/out blocks are
    lane-legal (last block dim a multiple of 128, or the full array extent)."""
    if batch <= target:
        return batch
    for tb in range(min(target, batch), 0, -1):
        if batch % tb:
            continue
        if (tb * dim_in) % 128 == 0 and (tb * dim_out) % 128 == 0:
            return tb
    # TODO(synk): pad B for awkward (B, dim_in, dim_out) combos instead of this
    # silent full-batch fallback (correct, but a single column tile serializes
    # the parallel grid axis on megacore parts).
    return batch


def _vmem_limit_bytes(working_set_bytes):
    try:
        cap = int(pltpu.get_tpu_info().vmem_capacity_bytes)
    except Exception:  # pragma: no cover - conservative fallback
        cap = 64 * 1024 * 1024
    want = max(32 * 1024 * 1024, int(working_set_bytes * 1.5))
    return int(min(want, int(cap * 0.8)))


def avwgcn_forward(x, node_embeddings, supports, weights_pool, bias_pool,
                   *, batch_tile=8, compute_dtype=jnp.bfloat16):
    """x: [B, N, dim_in], node_embeddings: [N, embed_dim], supports: [N, N],
       weights_pool: [embed_dim, cheb_k, dim_in, dim_out], bias_pool: [embed_dim, dim_out]
       returns [B, N, dim_out] (f32)."""
    B, N, dim_in = x.shape
    embed_dim, cheb_k, dim_in_w, dim_out = weights_pool.shape
    assert dim_in_w == dim_in
    assert cheb_k >= 2, "AVWGCN forward implicitly requires cheb_k >= 2"
    f32 = jnp.float32
    do = embed_dim * dim_out

    # --- layout prep (small XLA ops; the big x_g intermediate never hits HBM) ---
    x_all = jnp.transpose(x.astype(f32), (1, 0, 2)).reshape(N, B * dim_in)  # cols (b, i)
    sup = supports.astype(compute_dtype)
    # weights_pool [D,K,I,O] -> [K, I, D*O]   (rows i, cols (d, o) with o minor)
    w2 = jnp.transpose(weights_pool.astype(f32), (1, 2, 0, 3)).reshape(
        cheb_k, dim_in, do).astype(compute_dtype)
    emb_f = node_embeddings.astype(f32)
    bias = jnp.dot(emb_f, bias_pool.astype(f32))              # [N, O] precomputed once
    emb_rep = jnp.repeat(emb_f, dim_out, axis=1)              # [N, D*O]: emb[n,d] per (d,o)

    tb = _pick_batch_tile(B, dim_in, dim_out, batch_tile)
    grid = (B // tb, cheb_k)

    # TODO(synk): for very large N the resident [N, N] support block would need
    # an additional node-tiling of the propagation matmul; fine at AGCRN scales.
    cd_bytes = jnp.dtype(compute_dtype).itemsize
    working_set = (2 * N * N * cd_bytes              # supports (double-buffered)
                   + 2 * N * tb * dim_in * 4         # x block
                   + 2 * N * do * 4                  # emb_rep
                   + 2 * dim_in * do * cd_bytes      # weight slice
                   + 2 * N * dim_out * 4             # bias
                   + 2 * N * tb * dim_out * 4        # out block
                   + 2 * N * tb * dim_in * 4         # ping-pong scratch
                   + tb * N * do * 4)                # Z accumulator

    cost = pl.CostEstimate(
        flops=(2 * (cheb_k - 1) * N * N * B * dim_in
               + 2 * cheb_k * B * N * dim_in * do
               + 2 * B * N * do),
        transcendentals=0,
        bytes_accessed=(N * N * cd_bytes + 4 * N * B * dim_in + 4 * N * do
                        + cheb_k * dim_in * do * cd_bytes + 4 * N * dim_out
                        + 4 * N * B * dim_out))

    out_flat = pl.pallas_call(
        functools.partial(_avwgcn_kernel, compute_dtype=compute_dtype),
        out_shape=jax.ShapeDtypeStruct((N, B * dim_out), f32),
        grid=grid,
        in_specs=[
            pl.BlockSpec((N, N), lambda c, k: (0, 0)),                # supports (resident)
            pl.BlockSpec((N, tb * dim_in), lambda c, k: (0, c)),      # x column tile
            pl.BlockSpec((N, do), lambda c, k: (0, 0)),               # emb_rep (resident)
            pl.BlockSpec((1, dim_in, do), lambda c, k: (k, 0, 0)),    # weight slice k
            pl.BlockSpec((N, dim_out), lambda c, k: (0, 0)),          # bias (resident)
        ],
        out_specs=pl.BlockSpec((N, tb * dim_out), lambda c, k: (0, c)),
        scratch_shapes=[
            pltpu.VMEM((2, N, tb * dim_in), f32),       # Chebyshev ping-pong state
            pltpu.VMEM((tb, N, do), f32),               # Z accumulator
        ],
        compiler_params=pltpu.CompilerParams(
            dimension_semantics=("parallel", "arbitrary"),
            vmem_limit_bytes=_vmem_limit_bytes(working_set)),
        cost_estimate=cost,
    )(sup, x_all, emb_rep, w2, bias)

    # [N, B*O] -> [B, N, O]
    return jnp.transpose(out_flat.reshape(N, B, dim_out), (1, 0, 2))


# --------------------------------------------------------------------------- #
# Pure-JAX reference (transliteration of the PyTorch forward)
# --------------------------------------------------------------------------- #
def avwgcn_reference(x, node_embeddings, supports, weights_pool, bias_pool):
    hp = jax.lax.Precision.HIGHEST
    N = node_embeddings.shape[0]
    cheb_k = weights_pool.shape[1]
    support_set = [jnp.eye(N, dtype=x.dtype), supports]
    for _ in range(2, cheb_k):
        support_set.append(
            2.0 * jnp.matmul(supports, support_set[-1], precision=hp) - support_set[-2])
    x_g = jnp.stack([jnp.einsum('nm,bmi->bni', s, x, precision=hp)
                     for s in support_set], axis=0)
    x_g = jnp.transpose(x_g, (1, 2, 0, 3))                              # [B, N, K, I]
    weights = jnp.einsum('nd,dkio->nkio', node_embeddings, weights_pool, precision=hp)
    bias = jnp.matmul(node_embeddings, bias_pool, precision=hp)         # [N, O]
    return jnp.einsum('bnki,nkio->bno', x_g, weights, precision=hp) + bias


if __name__ == "__main__":
    # Small, deterministic example shapes consistent with the module.
    B, N = 2, 16
    dim_in, dim_out = 4, 8
    cheb_k, embed_dim = 3, 8

    key = jax.random.PRNGKey(0)
    k_x, k_emb, k_wp, k_bp = jax.random.split(key, 4)

    x = jax.random.normal(k_x, (B, N, dim_in), dtype=jnp.float32)
    node_embeddings = jax.random.normal(k_emb, (N, embed_dim), dtype=jnp.float32)
    # Deterministic adaptive adjacency, mimicking AGCRN's softmax(relu(E E^T)).
    supports = jax.nn.softmax(
        jax.nn.relu(node_embeddings @ node_embeddings.T), axis=-1
    ).astype(jnp.float32)

    weights_pool = 0.1 * jax.random.normal(
        k_wp, (embed_dim, cheb_k, dim_in, dim_out), dtype=jnp.float32)
    bias_pool = 0.1 * jax.random.normal(k_bp, (embed_dim, dim_out), dtype=jnp.float32)

    ref = jax.block_until_ready(
        avwgcn_reference(x, node_embeddings, supports, weights_pool, bias_pool))

    # Exact-math path (f32 MXU operands) -- tight tolerance.
    out_f32 = jax.block_until_ready(
        avwgcn_forward(x, node_embeddings, supports, weights_pool, bias_pool,
                       compute_dtype=jnp.float32))
    assert out_f32.shape == (B, N, dim_out)
    np.testing.assert_allclose(np.asarray(out_f32), np.asarray(ref),
                               rtol=1e-4, atol=1e-4)

    # Performance path (bf16 MXU operands, f32 accumulation) -- loosened tolerance.
    out_bf16 = jax.block_until_ready(
        avwgcn_forward(x, node_embeddings, supports, weights_pool, bias_pool,
                       compute_dtype=jnp.bfloat16))
    np.testing.assert_allclose(np.asarray(out_bf16), np.asarray(ref),
                               rtol=3e-2, atol=3e-2)

    print("KERNEL_OK")
</pallas_src>

<mosaic_0001>
module attributes {stable_mosaic.version = 11 : i64} {
  func.func @_avwgcn_kernel(%arg0: i32, %arg1: i32, %arg2: memref<16x16xf32, #tpu.memory_space<vmem>>, %arg3: memref<16x8xf32, #tpu.memory_space<vmem>>, %arg4: memref<16x64xf32, #tpu.memory_space<vmem>>, %arg5: memref<1x4x64xf32, #tpu.memory_space<vmem>>, %arg6: memref<16x8xf32, #tpu.memory_space<vmem>>, %arg7: memref<16x16xf32, #tpu.memory_space<vmem>>, %arg8: memref<2x16x8xf32, #tpu.memory_space<vmem>>, %arg9: memref<2x16x64xf32, #tpu.memory_space<vmem>>) attributes {dimension_semantics = [#tpu.dimension_semantics<parallel>, #tpu.dimension_semantics<arbitrary>], iteration_bounds = array<i64: 1, 3>, scalar_prefetch = 0 : i64, scratch_operands = 2 : i64, tpu.core_type = #tpu.core_type<tc>, window_params = [{pipeline_mode = #tpu.pipeline_mode<synchronous>, transform_indices = @transform_0, window_bounds = array<i64: 16, 16>}, {transform_indices = @transform_1, window_bounds = array<i64: 16, 8>}, {pipeline_mode = #tpu.pipeline_mode<synchronous>, transform_indices = @transform_2, window_bounds = array<i64: 16, 64>}, {transform_indices = @transform_3, window_bounds = array<i64: 1, 4, 64>}, {pipeline_mode = #tpu.pipeline_mode<synchronous>, transform_indices = @transform_4, window_bounds = array<i64: 16, 8>}, {transform_indices = @transform_5, window_bounds = array<i64: 16, 16>}]} {
    %c2_i32 = arith.constant 2 : i32
    %c0_i32 = arith.constant 0 : i32
    %0 = arith.cmpi eq, %c2_i32, %c0_i32 : i32
    %c1_i32 = arith.constant 1 : i32
    %1 = arith.select %0, %c1_i32, %c2_i32 : i32
    %2 = arith.remsi %arg1, %1 : i32
    %c0_i32_0 = arith.constant 0 : i32
    %3 = arith.cmpi ne, %2, %c0_i32_0 : i32
    %c0_i32_1 = arith.constant 0 : i32
    %4 = arith.cmpi slt, %2, %c0_i32_1 : i32
    %c0_i32_2 = arith.constant 0 : i32
    %5 = arith.cmpi slt, %1, %c0_i32_2 : i32
    %6 = arith.xori %4, %5 : i1
    %7 = arith.andi %6, %3 : i1
    %8 = arith.addi %2, %1 : i32
    %9 = arith.select %7, %8, %2 : i32
    %c0_i32_3 = arith.constant 0 : i32
    %10 = arith.cmpi eq, %arg1, %c0_i32_3 : i32
    %11 = arith.extui %10 : i1 to i32
    %c0_i32_4 = arith.constant 0 : i32
    %12 = arith.cmpi ne, %11, %c0_i32_4 : i32
    scf.if %12 {
      %cst_27 = arith.constant 0.000000e+00 : f32
      %43 = vector.broadcast %cst_27 : f32 to vector<2x16x64xf32>
      %c0_28 = arith.constant 0 : index
      %c0_29 = arith.constant 0 : index
      %c0_30 = arith.constant 0 : index
      %44 = vector.load %arg9[%c0_28, %c0_29, %c0_30] : memref<2x16x64xf32, #tpu.memory_space<vmem>>, vector<2x16x64xf32>
      tpu.vector_store %arg9[%c0_28, %c0_29, %c0_30], %43 {strides = array<i32>} : memref<2x16x64xf32, #tpu.memory_space<vmem>>, vector<2x16x64xf32>,
      %c0_31 = arith.constant 0 : index
      %c0_32 = arith.constant 0 : index
      %45 = vector.load %arg3[%c0_31, %c0_32] : memref<16x8xf32, #tpu.memory_space<vmem>>, vector<16x8xf32>
      %c0_33 = arith.constant 0 : index
      %c0_34 = arith.constant 0 : index
      %c0_35 = arith.constant 0 : index
      %46 = vector.load %arg8[%c0_33, %c0_34, %c0_35] : memref<2x16x8xf32, #tpu.memory_space<vmem>>, vector<1x16x8xf32>
      %47 = vector.shape_cast %46 : vector<1x16x8xf32> to vector<16x8xf32>
      %48 = vector.shape_cast %45 : vector<16x8xf32> to vector<1x16x8xf32>
      tpu.vector_store %arg8[%c0_33, %c0_34, %c0_35], %48 {strides = array<i32>} : memref<2x16x8xf32, #tpu.memory_space<vmem>>, vector<1x16x8xf32>,
    } else {
    }
    %c1_i32_5 = arith.constant 1 : i32
    %13 = arith.cmpi eq, %arg1, %c1_i32_5 : i32
    %14 = arith.extui %13 : i1 to i32
    %c0_i32_6 = arith.constant 0 : i32
    %15 = arith.cmpi ne, %14, %c0_i32_6 : i32
    scf.if %15 {
      %c0_27 = arith.constant 0 : index
      %c0_28 = arith.constant 0 : index
      %c0_29 = arith.constant 0 : index
      %43 = vector.load %arg8[%c0_27, %c0_28, %c0_29] : memref<2x16x8xf32, #tpu.memory_space<vmem>>, vector<1x16x8xf32>
      %44 = vector.shape_cast %43 : vector<1x16x8xf32> to vector<16x8xf32>
      %c0_30 = arith.constant 0 : index
      %c0_31 = arith.constant 0 : index
      %45 = vector.load %arg2[%c0_30, %c0_31] : memref<16x16xf32, #tpu.memory_space<vmem>>, vector<16x16xf32>
      %cst_32 = arith.constant dense<0.000000e+00> : vector<16x8xf32>
      %46 = tpu.matmul %45, %44, %cst_32 {dimension_numbers = #tpu.dot_dimension_numbers<[1], [0], [0], [1], [0, 0, 1, 1], [], []>} : vector<16x16xf32>, vector<16x8xf32>, vector<16x8xf32> -> vector<16x8xf32>
      %c1_33 = arith.constant 1 : index
      %c0_34 = arith.constant 0 : index
      %c0_35 = arith.constant 0 : index
      %47 = vector.load %arg8[%c1_33, %c0_34, %c0_35] : memref<2x16x8xf32, #tpu.memory_space<vmem>>, vector<1x16x8xf32>
      %48 = vector.shape_cast %47 : vector<1x16x8xf32> to vector<16x8xf32>
      %49 = vector.shape_cast %46 : vector<16x8xf32> to vector<1x16x8xf32>
      tpu.vector_store %arg8[%c1_33, %c0_34, %c0_35], %49 {strides = array<i32>} : memref<2x16x8xf32, #tpu.memory_space<vmem>>, vector<1x16x8xf32>,
    } else {
    }
    %c2_i32_7 = arith.constant 2 : i32
    %16 = arith.cmpi sge, %arg1, %c2_i32_7 : i32
    %17 = arith.extui %16 : i1 to i32
    %c0_i32_8 = arith.constant 0 : i32
    %18 = arith.cmpi ne, %17, %c0_i32_8 : i32
    scf.if %18 {
      %c1_i32_27 = arith.constant 1 : i32
      %43 = arith.subi %c1_i32_27, %9 : i32
      %44 = arith.index_cast %43 : i32 to index
      %c0_28 = arith.constant 0 : index
      %c0_29 = arith.constant 0 : index
      %45 = vector.load %arg8[%44, %c0_28, %c0_29] : memref<2x16x8xf32, #tpu.memory_space<vmem>>, vector<1x16x8xf32>
      %46 = vector.shape_cast %45 : vector<1x16x8xf32> to vector<16x8xf32>
      %47 = arith.index_cast %9 : i32 to index
      %c0_30 = arith.constant 0 : index
      %c0_31 = arith.constant 0 : index
      %48 = vector.load %arg8[%47, %c0_30, %c0_31] : memref<2x16x8xf32, #tpu.memory_space<vmem>>, vector<1x16x8xf32>
      %49 = vector.shape_cast %48 : vector<1x16x8xf32> to vector<16x8xf32>
      %c0_32 = arith.constant 0 : index
      %c0_33 = arith.constant 0 : index
      %50 = vector.load %arg2[%c0_32, %c0_33] : memref<16x16xf32, #tpu.memory_space<vmem>>, vector<16x16xf32>
      %cst_34 = arith.constant dense<0.000000e+00> : vector<16x8xf32>
      %51 = tpu.matmul %50, %46, %cst_34 {dimension_numbers = #tpu.dot_dimension_numbers<[1], [0], [0], [1], [0, 0, 1, 1], [], []>} : vector<16x16xf32>, vector<16x8xf32>, vector<16x8xf32> -> vector<16x8xf32>
      %cst_35 = arith.constant 2.000000e+00 : f32
      %52 = vector.broadcast %cst_35 : f32 to vector<16x8xf32>
      %53 = arith.mulf %52, %51 : vector<16x8xf32>
      %54 = arith.subf %53, %49 : vector<16x8xf32>
      %55 = arith.index_cast %9 : i32 to index
      %c0_36 = arith.constant 0 : index
      %c0_37 = arith.constant 0 : index
      %56 = vector.load %arg8[%55, %c0_36, %c0_37] : memref<2x16x8xf32, #tpu.memory_space<vmem>>, vector<1x16x8xf32>
      %57 = vector.shape_cast %56 : vector<1x16x8xf32> to vector<16x8xf32>
      %58 = vector.shape_cast %54 : vector<16x8xf32> to vector<1x16x8xf32>
      tpu.vector_store %arg8[%55, %c0_36, %c0_37], %58 {strides = array<i32>} : memref<2x16x8xf32, #tpu.memory_space<vmem>>, vector<1x16x8xf32>,
    } else {
    }
    %19 = arith.index_cast %9 : i32 to index
    %c0 = arith.constant 0 : index
    %c0_9 = arith.constant 0 : index
    %20 = vector.load %arg8[%19, %c0, %c0_9] : memref<2x16x8xf32, #tpu.memory_space<vmem>>, vector<1x16x8xf32>
    %21 = vector.shape_cast %20 : vector<1x16x8xf32> to vector<16x8xf32>
    %c0_10 = arith.constant 0 : index
    %c0_11 = arith.constant 0 : index
    %c0_12 = arith.constant 0 : index
    %22 = vector.load %arg5[%c0_10, %c0_11, %c0_12] : memref<1x4x64xf32, #tpu.memory_space<vmem>>, vector<1x4x64xf32>
    %23 = vector.shape_cast %22 : vector<1x4x64xf32> to vector<4x64xf32>
    %24 = vector.extract_strided_slice %21 {offsets = [0, 0], sizes = [16, 4], strides = [1, 1]} : vector<16x8xf32> to vector<16x4xf32>
    %c0_13 = arith.constant 0 : index
    %c0_14 = arith.constant 0 : index
    %c0_15 = arith.constant 0 : index
    %25 = vector.load %arg9[%c0_13, %c0_14, %c0_15] : memref<2x16x64xf32, #tpu.memory_space<vmem>>, vector<1x16x64xf32>
    %26 = vector.shape_cast %25 : vector<1x16x64xf32> to vector<16x64xf32>
    %cst = arith.constant dense<0.000000e+00> : vector<16x64xf32>
    %27 = tpu.matmul %24, %23, %cst {dimension_numbers = #tpu.dot_dimension_numbers<[1], [0], [0], [1], [0, 0, 1, 1], [], []>} : vector<16x4xf32>, vector<4x64xf32>, vector<16x64xf32> -> vector<16x64xf32>
    %28 = arith.addf %26, %27 : vector<16x64xf32>
    %c0_16 = arith.constant 0 : index
    %c0_17 = arith.constant 0 : index
    %c0_18 = arith.constant 0 : index
    %29 = vector.load %arg9[%c0_16, %c0_17, %c0_18] : memref<2x16x64xf32, #tpu.memory_space<vmem>>, vector<1x16x64xf32>
    %30 = vector.shape_cast %29 : vector<1x16x64xf32> to vector<16x64xf32>
    %31 = vector.shape_cast %28 : vector<16x64xf32> to vector<1x16x64xf32>
    tpu.vector_store %arg9[%c0_16, %c0_17, %c0_18], %31 {strides = array<i32>} : memref<2x16x64xf32, #tpu.memory_space<vmem>>, vector<1x16x64xf32>,
    %32 = vector.extract_strided_slice %21 {offsets = [0, 4], sizes = [16, 4], strides = [1, 1]} : vector<16x8xf32> to vector<16x4xf32>
    %c1 = arith.constant 1 : index
    %c0_19 = arith.constant 0 : index
    %c0_20 = arith.constant 0 : index
    %33 = vector.load %arg9[%c1, %c0_19, %c0_20] : memref<2x16x64xf32, #tpu.memory_space<vmem>>, vector<1x16x64xf32>
    %34 = vector.shape_cast %33 : vector<1x16x64xf32> to vector<16x64xf32>
    %cst_21 = arith.constant dense<0.000000e+00> : vector<16x64xf32>
    %35 = tpu.matmul %32, %23, %cst_21 {dimension_numbers = #tpu.dot_dimension_numbers<[1], [0], [0], [1], [0, 0, 1, 1], [], []>} : vector<16x4xf32>, vector<4x64xf32>, vector<16x64xf32> -> vector<16x64xf32>
    %36 = arith.addf %34, %35 : vector<16x64xf32>
    %c1_22 = arith.constant 1 : index
    %c0_23 = arith.constant 0 : index
    %c0_24 = arith.constant 0 : index
    %37 = vector.load %arg9[%c1_22, %c0_23, %c0_24] : memref<2x16x64xf32, #tpu.memory_space<vmem>>, vector<1x16x64xf32>
    %38 = vector.shape_cast %37 : vector<1x16x64xf32> to vector<16x64xf32>
    %39 = vector.shape_cast %36 : vector<16x64xf32> to vector<1x16x64xf32>
    tpu.vector_store %arg9[%c1_22, %c0_23, %c0_24], %39 {strides = array<i32>} : memref<2x16x64xf32, #tpu.memory_space<vmem>>, vector<1x16x64xf32>,
    %c2_i32_25 = arith.constant 2 : i32
    %40 = arith.cmpi eq, %arg1, %c2_i32_25 : i32
    %41 = arith.extui %40 : i1 to i32
    %c0_i32_26 = arith.constant 0 : i32
    %42 = arith.cmpi ne, %41, %c0_i32_26 : i32
    scf.if %42 {
      %c0_27 = arith.constant 0 : index
      %c0_28 = arith.constant 0 : index
      %43 = vector.load %arg4[%c0_27, %c0_28] : memref<16x64xf32, #tpu.memory_space<vmem>>, vector<16x64xf32>
      %c0_29 = arith.constant 0 : index
      %c0_30 = arith.constant 0 : index
      %44 = vector.load %arg6[%c0_29, %c0_30] : memref<16x8xf32, #tpu.memory_space<vmem>>, vector<16x8xf32>
      %c0_31 = arith.constant 0 : index
      %c0_32 = arith.constant 0 : index
      %c0_33 = arith.constant 0 : index
      %45 = vector.load %arg9[%c0_31, %c0_32, %c0_33] : memref<2x16x64xf32, #tpu.memory_space<vmem>>, vector<1x16x64xf32>
      %46 = vector.shape_cast %45 : vector<1x16x64xf32> to vector<16x64xf32>
      %47 = arith.mulf %46, %43 : vector<16x64xf32>
      %48 = vector.extract_strided_slice %47 {offsets = [0, 0], sizes = [16, 8], strides = [1, 1]} : vector<16x64xf32> to vector<16x8xf32>
      %49 = vector.extract_strided_slice %47 {offsets = [0, 8], sizes = [16, 8], strides = [1, 1]} : vector<16x64xf32> to vector<16x8xf32>
      %50 = arith.addf %48, %49 : vector<16x8xf32>
      %51 = vector.extract_strided_slice %47 {offsets = [0, 16], sizes = [16, 8], strides = [1, 1]} : vector<16x64xf32> to vector<16x8xf32>
      %52 = arith.addf %50, %51 : vector<16x8xf32>
      %53 = vector.extract_strided_slice %47 {offsets = [0, 24], sizes = [16, 8], strides = [1, 1]} : vector<16x64xf32> to vector<16x8xf32>
      %54 = arith.addf %52, %53 : vector<16x8xf32>
      %55 = vector.extract_strided_slice %47 {offsets = [0, 32], sizes = [16, 8], strides = [1, 1]} : vector<16x64xf32> to vector<16x8xf32>
      %56 = arith.addf %54, %55 : vector<16x8xf32>
      %57 = vector.extract_strided_slice %47 {offsets = [0, 40], sizes = [16, 8], strides = [1, 1]} : vector<16x64xf32> to vector<16x8xf32>
      %58 = arith.addf %56, %57 : vector<16x8xf32>
      %59 = vector.extract_strided_slice %47 {offsets = [0, 48], sizes = [16, 8], strides = [1, 1]} : vector<16x64xf32> to vector<16x8xf32>
      %60 = arith.addf %58, %59 : vector<16x8xf32>
      %61 = vector.extract_strided_slice %47 {offsets = [0, 56], sizes = [16, 8], strides = [1, 1]} : vector<16x64xf32> to vector<16x8xf32>
      %62 = arith.addf %60, %61 : vector<16x8xf32>
      %63 = arith.addf %62, %44 : vector<16x8xf32>
      %c1_34 = arith.constant 1 : index
      %c0_35 = arith.constant 0 : index
      %c0_36 = arith.constant 0 : index
      %64 = vector.load %arg9[%c1_34, %c0_35, %c0_36] : memref<2x16x64xf32, #tpu.memory_space<vmem>>, vector<1x16x64xf32>
      %65 = vector.shape_cast %64 : vector<1x16x64xf32> to vector<16x64xf32>
      %66 = arith.mulf %65, %43 : vector<16x64xf32>
      %67 = vector.extract_strided_slice %66 {offsets = [0, 0], sizes = [16, 8], strides = [1, 1]} : vector<16x64xf32> to vector<16x8xf32>
      %68 = vector.extract_strided_slice %66 {offsets = [0, 8], sizes = [16, 8], strides = [1, 1]} : vector<16x64xf32> to vector<16x8xf32>
      %69 = arith.addf %67, %68 : vector<16x8xf32>
      %70 = vector.extract_strided_slice %66 {offsets = [0, 16], sizes = [16, 8], strides = [1, 1]} : vector<16x64xf32> to vector<16x8xf32>
      %71 = arith.addf %69, %70 : vector<16x8xf32>
      %72 = vector.extract_strided_slice %66 {offsets = [0, 24], sizes = [16, 8], strides = [1, 1]} : vector<16x64xf32> to vector<16x8xf32>
      %73 = arith.addf %71, %72 : vector<16x8xf32>
      %74 = vector.extract_strided_slice %66 {offsets = [0, 32], sizes = [16, 8], strides = [1, 1]} : vector<16x64xf32> to vector<16x8xf32>
      %75 = arith.addf %73, %74 : vector<16x8xf32>
      %76 = vector.extract_strided_slice %66 {offsets = [0, 40], sizes = [16, 8], strides = [1, 1]} : vector<16x64xf32> to vector<16x8xf32>
      %77 = arith.addf %75, %76 : vector<16x8xf32>
      %78 = vector.extract_strided_slice %66 {offsets = [0, 48], sizes = [16, 8], strides = [1, 1]} : vector<16x64xf32> to vector<16x8xf32>
      %79 = arith.addf %77, %78 : vector<16x8xf32>
      %80 = vector.extract_strided_slice %66 {offsets = [0, 56], sizes = [16, 8], strides = [1, 1]} : vector<16x64xf32> to vector<16x8xf32>
      %81 = arith.addf %79, %80 : vector<16x8xf32>
      %82 = arith.addf %81, %44 : vector<16x8xf32>
      %83 = tpu.concatenate %63, %82 in 1 : vector<16x8xf32>, vector<16x8xf32> -> vector<16x16xf32>
      %c0_37 = arith.constant 0 : index
      %c0_38 = arith.constant 0 : index
      %84 = vector.load %arg7[%c0_37, %c0_38] : memref<16x16xf32, #tpu.memory_space<vmem>>, vector<16x16xf32>
      tpu.vector_store %arg7[%c0_37, %c0_38], %83 {strides = array<i32>} : memref<16x16xf32, #tpu.memory_space<vmem>>, vector<16x16xf32>,
    } else {
    }
    return
  }
  func.func @transform_0(%arg0: i32, %arg1: i32) -> (i32, i32) {
    %c0_i32 = arith.constant 0 : i32
    %c0_i32_0 = arith.constant 0 : i32
    %c0_i32_1 = arith.constant 0 : i32
    return %c0_i32, %c0_i32_0 : i32, i32
  }
  func.func @transform_1(%arg0: i32, %arg1: i32) -> (i32, i32) {
    %c0_i32 = arith.constant 0 : i32
    %c0_i32_0 = arith.constant 0 : i32
    return %c0_i32, %arg0 : i32, i32
  }
  func.func @transform_2(%arg0: i32, %arg1: i32) -> (i32, i32) {
    %c0_i32 = arith.constant 0 : i32
    %c0_i32_0 = arith.constant 0 : i32
    %c0_i32_1 = arith.constant 0 : i32
    return %c0_i32, %c0_i32_0 : i32, i32
  }
  func.func @transform_3(%arg0: i32, %arg1: i32) -> (i32, i32, i32) {
    %c0_i32 = arith.constant 0 : i32
    %c0_i32_0 = arith.constant 0 : i32
    %c0_i32_1 = arith.constant 0 : i32
    return %arg1, %c0_i32, %c0_i32_0 : i32, i32, i32
  }
  func.func @transform_4(%arg0: i32, %arg1: i32) -> (i32, i32) {
    %c0_i32 = arith.constant 0 : i32
    %c0_i32_0 = arith.constant 0 : i32
    %c0_i32_1 = arith.constant 0 : i32
    return %c0_i32, %c0_i32_0 : i32, i32
  }
  func.func @transform_5(%arg0: i32, %arg1: i32) -> (i32, i32) {
    %c0_i32 = arith.constant 0 : i32
    %c0_i32_0 = arith.constant 0 : i32
    return %c0_i32, %arg0 : i32, i32
  }
}

</mosaic_0001>

<bundles_post_ra>
// kernel: tpu_custom_call.1
= control target key start
LH: loop header
LB: loop body
LE: loop exit
PB: predicated region body
PF: predicated region fallthrough
CT: control target
= control target key end

     0   :  { %10 = vsyncpa [#allocation5], 0  ;;  %s1102_s18 = smov 0   ;;  %s1104_s19 = smov 0   ;;  %s1213_s0 = inlined_call_operand.vmem [shape: f32[16,16], index: 0, kind: input, shape index: {}]   ;;  %s1214_s1 = inlined_call_operand.vmem [shape: f32[16,8], index: 1, kind: input, shape index: {}]   ;;  %s1215_s2 = inlined_call_operand.vmem [shape: f32[16,64], index: 2, kind: input, shape index: {}]   ;;  %s1216_s3 = inlined_call_operand.vmem [shape: f32[3,4,64], index: 3, kind: input, shape index: {}]   ;;  %s1217_s4 = inlined_call_operand.vmem [shape: f32[16,8], index: 4, kind: input, shape index: {}]   ;;  %s1218_s5 = inlined_call_operand.hbm [shape: f32[16,16], index: 5, kind: output, shape index: {}]  }
   0x1   :  { %s1106_s20 = smov 0  }
   0x2 LB: > { %s886_s21 = sadd.s32 4294967295, %s1057_s20   ;;  %s25_s22 = sadd.s32 1, %s1053_s19  ;;  %s1057_s20 = sphi %s1106_s20, %s16_s20   ;;  %s1053_s19 = sphi %s1104_s19, %s1221_s19   ;;  %s1049_s18 = sphi %s1102_s18, %s1220_s18  }
   0x3   : > { %p26_p0 = scmp.ge.s32.totalorder %s25_s22, 3  ;;  %p890_p1 = scmp.ge.s32.totalorder %s1057_s20, 1 }
   0x4   : > { %p208_p2 = scmp.lt.s32.totalorder %s1057_s20, 4 }
   0x5   : > { %s1223_s22 = smov (%p26_p0, %s25_s22), 0 }
   0x6   : > { %p209_p3 = pnand %p890_p1, %p208_p2 }
   0x7   : > { %p238_p4 = scmp.lt.s32.totalorder (!%p209_p3), %s1049_s18, 2  ;;  %p242_p5 = scmp.lt.s32.totalorder (!%p209_p3), %s1049_s18, 0 }
   0x8   : > { %212 = sbr.rel (%p209_p3) target bundleno = 1114 (0x45a), region = 40  ;;  %s243_s23 = ssub.s32 (!%p209_p3), 0, %s1049_s18 }
   0x9   : > { %s892_s25 = smin.u32 (!%p209_p3), %s1049_s18, %s243_s23  ;;  %p895_p7 = scmp.ne.s32.totalorder (!%p209_p3), %s1049_s18, 0 }
   0xa   : > { %s245_s27 = sand.u32 (!%p209_p3), 1, %s892_s25  }
   0xb   : > { %s246_s6 = ssub.s32 (!%p209_p3), 0, %s245_s27 }
   0xf   : > { %s239_s24 = scalar_select %p238_p4, %s1049_s18, 2 }
  0x10   : > { %s1225_s6 = smov (!%p242_p5, %s246_s6), %s245_s27  ;;  %257 = sbr.rel (%p895_p7) target bundleno = 23 (0x17), region = 44 }
  0x11   : > { %s891_s26 = sshll.u32 %s239_s24, 2  ;;  %p894_p6 = scmp.lt.s32.totalorder %s1225_s6, 0  ;;  %vm258_vm0 = vcmask (!%p895_p7), 523264   ;;  %v263_v0 = vld [vmem:[%s1214_s1] sm:$0xff] (!%p895_p7)  ;;  %vm265_vm1 = vcmask (!%p895_p7), 64512   ;;  %v264_v1 = vld [vmem:[%s1214_s1 + $0x8] sm:$0xff] (!%p895_p7) }
  0x12   : > { %s1133_s30 = scalar_lea.vmem %s1216_s3, %s891_s26  ;;  %s252_s7 = sadd.s32 2, %s1225_s6  ;;  %v1059_v2 = vmov (!%p895_p7), 0.0   ;;  %266 = vst.msk [vmem:[#allocation2] sm:$0xff] (!%p895_p7), %vm265_vm1, %v263_v0  ;;  %267 = vst.msk [vmem:[#allocation2 + $0x8] sm:$0xff] (!%p895_p7), %vm265_vm1, %v264_v1 }
  0x13   : > { %s1227_s7 = smov (!%p894_p6, %s252_s7), %s1225_s6  ;;  %259 = vst.msk [vmem:[#allocation3] sm:$0xff] (!%p895_p7), %vm258_vm0, %v1059_v2  ;;  %260 = vst.msk [vmem:[#allocation3 + $0x8] sm:$0xff] (!%p895_p7), %vm258_vm0, %v1059_v2 }
  0x14   : > { %261 = vst.msk [vmem:[#allocation3 + $0x10] sm:$0xff] (!%p895_p7), %vm258_vm0, %v1059_v2  ;;  %262 = vst.msk [vmem:[#allocation3 + $0x18] sm:$0xff] (!%p895_p7), %vm258_vm0, %v1059_v2 }
  0x17 PF: > { %p896_p8 = scmp.ne.s32.totalorder %s1049_s18, 1 }
  0x18   : > { %v274_v5 = vld [vmem:[%s1213_s0] sm:$0xff] (!%p896_p8)  ;;  %vm276_vm2 = vcmask (!%p896_p8), 130048   ;;  %v275_v7 = vld [vmem:[%s1213_s0 + $0x8] sm:$0xff] (!%p896_p8)  ;;  %vm359_vm3 = vcmask (!%p896_p8), 64512  }
  0x19   : > { %271 = sbr.rel (%p896_p8) target bundleno = 246 (0xf6), region = 48  ;;  %v272_v3 = vld [vmem:[#allocation2] sm:$0xff] (!%p896_p8)  ;;  %v273_v4 = vld [vmem:[#allocation2 + $0x8] sm:$0xff] (!%p896_p8)  ;;  %934 = vmatprep.mubr.msk.f32.mxu0 (!%p896_p8), %vm276_vm2, %v274_v5 }
  0x1a   : > { %v954_v6 = vpack.c.bf16 (!%p896_p8), %v273_v4, %v272_v3 }
  0x1c   : > { %955 = vmatprep.subr.bf16.mxu0 (!%p896_p8), %v954_v6 }
  0x1d   : > { %957 = vmatpush3.bf16.msra.mxu0 (!%p896_p8), %v954_v6 }
  0x20   : > { %935 = vmatmul.mubr.msk.f32.vlgmr.msra.gmra.mrb[0].mxu0 %vm276_vm2, %v275_v7 }
  0xf3   : > { %v936_v8 = vpop.f32.mrb[0].mxu0 }
  0xf4   : > { %361 = vst.msk [vmem:[#allocation2 + $0x18] sm:$0xff] %vm359_vm3, %v936_v8  ;;  %v349_v9 = vpop.f32.mrb[1].mxu0 }
  0xf5   : > { %360 = vst.msk [vmem:[#allocation2 + $0x10] sm:$0xff] %vm359_vm3, %v349_v9 }
  0xf6 PF: > { %365 = sbr.rel (%p238_p4) target bundleno = 477 (0x1dd), region = 52  ;;  %s366_s16 = ssub.s32 (!%p238_p4), 1, %s1227_s7  ;;  %v375_v10 = vld [vmem:[%s1213_s0] sm:$0xff] (!%p238_p4)  ;;  %vm377_vm4 = vcmask (!%p238_p4), 130048   ;;  %v376_v14 = vld [vmem:[%s1213_s0 + $0x8] sm:$0xff] (!%p238_p4)  ;;  %vm463_vm5 = vcmask (!%p238_p4), 64512  }
  0xf7   : > { %s900_s24 = sshll.u32 (!%p238_p4), %s366_s16, 4  ;;  %941 = vmatprep.mubr.msk.f32.mxu0 (!%p238_p4), %vm377_vm4, %v375_v10  ;;  %s901_s28 = sshll.u32 (!%p238_p4), %s1227_s7, 4 }
  0xf8   : > { %s368_s25 = scalar_lea.vmem (!%p238_p4), [#allocation2], %s900_s24  ;;  %s372_s29 = scalar_lea.vmem (!%p238_p4), [#allocation2], %s901_s28 }
  0xfc   : > { %v369_v11 = vld [vmem:[%s368_s25] sm:$0xff] (!%p238_p4)  ;;  %v370_v12 = vld [vmem:[%s368_s25 + $0x8] sm:$0xff] (!%p238_p4) }
  0xfd   : > { %v958_v13 = vpack.c.bf16 %v370_v12, %v369_v11  ;;  %v374_v15 = vld [vmem:[%s372_s29 + $0x8] sm:$0xff]  ;;  %v373_v18 = vld [vmem:[%s372_s29] sm:$0xff] }
  0xff   : > { %959 = vmatprep.subr.bf16.mxu0 %v958_v13 }
 0x100   : > { %961 = vmatpush3.bf16.msra.mxu0 %v958_v13 }
 0x103   : > { %942 = vmatmul.mubr.msk.f32.vlgmr.msra.gmra.mrb[0].mxu0 %vm377_vm4, %v376_v14 }
 0x1d6   : > { %v943_v16 = vpop.f32.mrb[0].mxu0 }
 0x1d7   : > { %v460_v17 = vmul.f32 2.0, %v943_v16  ;;  %v450_v19 = vpop.f32.mrb[1].mxu0 }
 0x1d8   : > { %v459_v20 = vmul.f32 2.0, %v450_v19 }
 0x1d9   : > { %v462_v21 = vsub.f32 %v460_v17, %v374_v15 }
 0x1da   : > { %v461_v22 = vsub.f32 %v459_v20, %v373_v18 }
 0x1db   : > { %465 = vst.msk [vmem:[%s372_s29 + $0x8] sm:$0xff] %vm463_vm5, %v462_v21 }
 0x1dc   : > { %464 = vst.msk [vmem:[%s372_s29] sm:$0xff] %vm463_vm5, %v461_v22 }
 0x1dd PF: > { %s904_s6 = sshll.u32 %s1227_s7, 4  ;;  %v470_v23 = vld [vmem:[%s1133_s30] sm:$0xf]  ;;  %vm480_vm6 = vcmask 1043456   ;;  %vm473_vm7 = vcmask 31744   ;;  %s1060_s9 = smov 124  }
 0x1de   : > { %944 = vmatprep.subr.msk.mxu0 %vm480_vm6, %v470_v23  ;;  %949 = vmatprep.subr.msk.mxu1 %vm480_vm6, %v470_v23  ;;  %s467_s8 = scalar_lea.vmem [#allocation2], %s904_s6  ;;  %v472_v28 = vld [vmem:[#allocation3 + $0x8] sm:$0xff]  ;;  %v471_v29 = vld [vmem:[#allocation3] sm:$0xff]  ;;  %vm561_vm8 = vcmask 523264   ;;  %v566_v34 = vld [vmem:[#allocation3 + $0x18] sm:$0xff]  ;;  %p911_p9 = scmp.ne.s32.totalorder %s1049_s18, 2 }
 0x1df   : > { %945 = vmatpush3.msk.msra.mxu0 %vm480_vm6, %v470_v23  ;;  %950 = vmatpush3.msk.msra.mxu1 %vm480_vm6, %v470_v23  ;;  %v565_v35 = vld [vmem:[#allocation3 + $0x10] sm:$0xff]  ;;  %v658_v40 = vld [vmem:[%s1215_s2] sm:$0xff] (!%p911_p9)  ;;  %v659_v42 = vld [vmem:[%s1215_s2 + $0x8] sm:$0xff] (!%p911_p9)  ;;  %s1061_s12 = smov (!%p911_p9), 112   ;;  %s1062_s13 = smov (!%p911_p9), 120   ;;  %vm798_vm9 = vcmask (!%p911_p9), 64512  }
 0x1e0   : > { %s1063_s18 = smov (!%p911_p9), 104   ;;  %s1064_s14 = smov (!%p911_p9), 96   ;;  %v661_v10 = vld [vmem:[%s1217_s4 + $0x8] sm:$0xff] (!%p911_p9)  ;;  %v660_v12 = vld [vmem:[%s1217_s4] sm:$0xff] (!%p911_p9)  ;;  %vm801_vm10 = vcmask (!%p911_p9), 130048  }
 0x1e1   : > { %s1065_s15 = smov (!%p911_p9), 88   ;;  %s1066_s16 = smov (!%p911_p9), 80  }
 0x1e2   : > { %s1067_s17 = smov (!%p911_p9), 72   ;;  %s1068_s27 = smov (!%p911_p9), 8  }
 0x1e3   : > { %v468_v24 = vld [vmem:[%s467_s8] sm:$0xff]  ;;  %v469_v25 = vld [vmem:[%s467_s8 + $0x8] sm:$0xff] }
 0x1e4   : > { %567 = vrot.lane.b32.xlu0 %v468_v24, %s1060_s9  ;;  %946 = vmatprep.mubr.msk.f32.mxu0 %vm473_vm7, %v468_v24 }
 0x1e5   : > { %947 = vmatmul.mubr.msk.f32.vlgmr.msra.gmra.mrb[0].mxu0 %vm473_vm7, %v469_v25 }
 0x1e8   : > { %569 = vrot.lane.b32.xlu0 %v469_v25, %s1060_s9 }
 0x256   : > { %v568_v26 = vpop.permute.xlu0 %567 }
 0x257   : > { %951 = vmatprep.mubr.msk.f32.mxu1 %vm473_vm7, %v568_v26 }
 0x25a   : > { %v570_v27 = vpop.permute.xlu0 %569 }
 0x25b   : > { %952 = vmatmul.mubr.msk.f32.vlgmr.msra.gmra.mrb[0].mxu1 %vm473_vm7, %v570_v27 }
 0x2b8   : > { %v948_v30 = vpop.f32.mrb[0].mxu0 }
 0x2b9   : > { %v560_v31 = vadd.f32 %v948_v30, %v472_v28  ;;  %v550_v32 = vpop.f32.mrb[1].mxu0 }
 0x2ba   : > { %v559_v33 = vadd.f32 %v550_v32, %v471_v29 }
 0x2bb   : > { %563 = vst.msk [vmem:[#allocation3 + $0x8] sm:$0xff] %vm561_vm8, %v560_v31 }
 0x2bc   : > { %562 = vst.msk [vmem:[#allocation3] sm:$0xff] %vm561_vm8, %v559_v33 }
 0x2c2   : > { %v663_v46 = vld [vmem:[#allocation3 + $0x8] sm:$0xff] (!%p911_p9) }
 0x2c3   : > { %v662_v47 = vld [vmem:[#allocation3] sm:$0xff] (!%p911_p9)  ;;  %v665_v48 = vmul.f32 (!%p911_p9), %v663_v46, %v659_v42 }
 0x2c4   : > { %v664_v49 = vmul.f32 (!%p911_p9), %v662_v47, %v658_v40 }
 0x32c   : > { %657 = sbr.rel (%p911_p9) target bundleno = 1088 (0x440), region = 56 }
 0x32e   : > { %v953_v36 = vpop.f32.mrb[0].mxu1 }
 0x32f   : > { %v651_v37 = vadd.f32 %v953_v36, %v566_v34  ;;  %v641_v38 = vpop.f32.mrb[1].mxu1 }
 0x330   : > { %v650_v39 = vadd.f32 %v641_v38, %v565_v35 }
 0x331   : > { %653 = vst.msk [vmem:[#allocation3 + $0x18] sm:$0xff] %vm561_vm8, %v651_v37 }
 0x332   : > { %652 = vst.msk [vmem:[#allocation3 + $0x10] sm:$0xff] %vm561_vm8, %v650_v39 }
 0x338   : > { %v727_v44 = vld [vmem:[#allocation3 + $0x18] sm:$0xff] }
 0x339   : > { %v726_v41 = vld [vmem:[#allocation3 + $0x10] sm:$0xff]  ;;  %v729_v45 = vmul.f32 %v727_v44, %v659_v42 }
 0x33a   : > { %v728_v43 = vmul.f32 %v726_v41, %v658_v40 }
 0x33c   : > { %740 = vrot.lane.b32.xlu1 %v728_v43, %s1061_s12  ;;  %732 = vrot.lane.b32.xlu0 %v728_v43, %s1062_s13 }
 0x340   : > { %742 = vrot.lane.b32.xlu1 %v729_v45, %s1061_s12  ;;  %734 = vrot.lane.b32.xlu0 %v729_v45, %s1062_s13 }
 0x344   : > { %750 = vrot.lane.b32.xlu1 %v729_v45, %s1063_s18  ;;  %748 = vrot.lane.b32.xlu0 %v728_v43, %s1063_s18 }
 0x348   : > { %758 = vrot.lane.b32.xlu1 %v729_v45, %s1064_s14  ;;  %756 = vrot.lane.b32.xlu0 %v728_v43, %s1064_s14 }
 0x34c   : > { %766 = vrot.lane.b32.xlu1 %v729_v45, %s1065_s15  ;;  %764 = vrot.lane.b32.xlu0 %v728_v43, %s1065_s15 }
 0x350   : > { %774 = vrot.lane.b32.xlu1 %v729_v45, %s1066_s16  ;;  %772 = vrot.lane.b32.xlu0 %v728_v43, %s1066_s16 }
 0x354   : > { %782 = vrot.lane.b32.xlu1 %v729_v45, %s1067_s17  ;;  %780 = vrot.lane.b32.xlu0 %v728_v43, %s1067_s17 }
 0x358   : > { %670 = vrot.lane.b32.xlu1 %v665_v48, %s1062_s13  ;;  %668 = vrot.lane.b32.xlu0 %v664_v49, %s1062_s13 }
 0x35c   : > { %678 = vrot.lane.b32.xlu1 %v665_v48, %s1061_s12  ;;  %676 = vrot.lane.b32.xlu0 %v664_v49, %s1061_s12 }
 0x360   : > { %686 = vrot.lane.b32.xlu1 %v665_v48, %s1063_s18  ;;  %684 = vrot.lane.b32.xlu0 %v664_v49, %s1063_s18 }
 0x364   : > { %694 = vrot.lane.b32.xlu1 %v665_v48, %s1064_s14  ;;  %692 = vrot.lane.b32.xlu0 %v664_v49, %s1064_s14 }
 0x368   : > { %702 = vrot.lane.b32.xlu1 %v665_v48, %s1065_s15  ;;  %700 = vrot.lane.b32.xlu0 %v664_v49, %s1065_s15 }
 0x36c   : > { %710 = vrot.lane.b32.xlu1 %v665_v48, %s1066_s16  ;;  %708 = vrot.lane.b32.xlu0 %v664_v49, %s1066_s16 }
 0x370   : > { %718 = vrot.lane.b32.xlu1 %v665_v48, %s1067_s17  ;;  %716 = vrot.lane.b32.xlu0 %v664_v49, %s1067_s17 }
 0x3ae   : > { %v741_v50 = vpop.permute.xlu1 %740  ;;  %v733_v51 = vpop.permute.xlu0 %732 }
 0x3af   : > { %v738_v57 = vadd.f32 %v733_v51, %v728_v43 }
 0x3b1   : > { %v746_v61 = vadd.f32 %v741_v50, %v738_v57 }
 0x3b2   : > { %v743_v52 = vpop.permute.xlu1 %742  ;;  %v735_v53 = vpop.permute.xlu0 %734 }
 0x3b3   : > { %v739_v56 = vadd.f32 %v735_v53, %v729_v45 }
 0x3b5   : > { %v747_v60 = vadd.f32 %v743_v52, %v739_v56 }
 0x3b6   : > { %v751_v54 = vpop.permute.xlu1 %750  ;;  %v749_v55 = vpop.permute.xlu0 %748 }
 0x3b7   : > { %v755_v0 = vadd.f32 %v751_v54, %v747_v60  ;;  %v754_v1 = vadd.f32 %v749_v55, %v746_v61 }
 0x3ba   : > { %v759_v58 = vpop.permute.xlu1 %758  ;;  %v757_v59 = vpop.permute.xlu0 %756 }
 0x3bb   : > { %v763_v2 = vadd.f32 %v759_v58, %v755_v0  ;;  %v762_v3 = vadd.f32 %v757_v59, %v754_v1 }
 0x3be   : > { %v767_v62 = vpop.permute.xlu1 %766  ;;  %v765_v63 = vpop.permute.xlu0 %764 }
 0x3bf   : > { %v771_v6 = vadd.f32 %v767_v62, %v763_v2  ;;  %v770_v7 = vadd.f32 %v765_v63, %v762_v3 }
 0x3c2   : > { %v775_v4 = vpop.permute.xlu1 %774  ;;  %v773_v5 = vpop.permute.xlu0 %772 }
 0x3c3   : > { %v779_v8 = vadd.f32 %v775_v4, %v771_v6  ;;  %v778_v9 = vadd.f32 %v773_v5, %v770_v7 }
 0x3c6   : > { %v783_v11 = vpop.permute.xlu1 %782  ;;  %v781_v13 = vpop.permute.xlu0 %780 }
 0x3c7   : > { %v787_v14 = vadd.f32 %v783_v11, %v779_v8  ;;  %v786_v15 = vadd.f32 %v781_v13, %v778_v9 }
 0x3c9   : > { %v789_v16 = vadd.f32 %v787_v14, %v661_v10  ;;  %v788_v17 = vadd.f32 %v786_v15, %v660_v12 }
 0x3ca   : > { %v671_v18 = vpop.permute.xlu1 %670  ;;  %v669_v19 = vpop.permute.xlu0 %668 }
 0x3cb   : > { %794 = vrot.lane.b32.xlu1 %v789_v16, %s1068_s27  ;;  %792 = vrot.lane.b32.xlu0 %v788_v17, %s1068_s27  ;;  %v675_v24 = vadd.f32 %v671_v18, %v665_v48  ;;  %v674_v25 = vadd.f32 %v669_v19, %v664_v49 }
 0x3ce   : > { %v679_v20 = vpop.permute.xlu1 %678  ;;  %v677_v21 = vpop.permute.xlu0 %676 }
 0x3cf   : > { %v683_v28 = vadd.f32 %v679_v20, %v675_v24  ;;  %v682_v29 = vadd.f32 %v677_v21, %v674_v25 }
 0x3d2   : > { %v687_v22 = vpop.permute.xlu1 %686  ;;  %v685_v23 = vpop.permute.xlu0 %684 }
 0x3d3   : > { %v691_v30 = vadd.f32 %v687_v22, %v683_v28  ;;  %v690_v31 = vadd.f32 %v685_v23, %v682_v29 }
 0x3d6   : > { %v695_v26 = vpop.permute.xlu1 %694  ;;  %v693_v27 = vpop.permute.xlu0 %692 }
 0x3d7   : > { %v699_v34 = vadd.f32 %v695_v26, %v691_v30  ;;  %v698_v35 = vadd.f32 %v693_v27, %v690_v31 }
 0x3da   : > { %v703_v32 = vpop.permute.xlu1 %702  ;;  %v701_v33 = vpop.permute.xlu0 %700 }
 0x3db   : > { %v707_v38 = vadd.f32 %v703_v32, %v699_v34  ;;  %v706_v39 = vadd.f32 %v701_v33, %v698_v35 }
 0x3de   : > { %v711_v36 = vpop.permute.xlu1 %710  ;;  %v709_v37 = vpop.permute.xlu0 %708 }
 0x3df   : > { %v715_v40 = vadd.f32 %v711_v36, %v707_v38  ;;  %v714_v41 = vadd.f32 %v709_v37, %v706_v39 }
 0x3e2   : > { %v719_v42 = vpop.permute.xlu1 %718  ;;  %v717_v43 = vpop.permute.xlu0 %716 }
 0x3e3   : > { %v723_v44 = vadd.f32 %v719_v42, %v715_v40  ;;  %v722_v45 = vadd.f32 %v717_v43, %v714_v41 }
 0x3e5   : > { %v725_v46 = vadd.f32 %v723_v44, %v661_v10  ;;  %v724_v47 = vadd.f32 %v722_v45, %v660_v12 }
 0x43d   : > { %v795_v48 = vpop.permute.xlu1 %794  ;;  %v793_v49 = vpop.permute.xlu0 %792 }
 0x43e   : > { %v800_v50 = vsel %vm798_vm9, %v725_v46, %v795_v48  ;;  %v799_v51 = vsel %vm798_vm9, %v724_v47, %v793_v49 }
 0x43f   : > { %803 = vst.msk [vmem:[#allocation4 + $0x8] sm:$0xff] %vm801_vm10, %v800_v50  ;;  %802 = vst.msk [vmem:[#allocation4] sm:$0xff] %vm801_vm10, %v799_v51 }
 0x440 PF: > { %p1178_p10 = scmp.eq.s32.totalorder %s886_s21, 2  ;;  %s1069_s29 = smov [#allocation4]  }
 0x441   : > { %s812_s6 = sshll.u32 %s1069_s29, 4  ;;  %s813_s6 = int_to_ptr.vmem [resolvable:$true] %s812_s6 }
 0x442   : > { %s1005_s8 = scalar_lea.vmem %s813_s6, 256  ;;  %p1012_p0 = scmp.lt.s32.totalorder %s813_s6, %s813_s6 }
 0x443   : > { %p1006_p11 = scmp.ne.s32.totalorder %s813_s6, %s1005_s8  ;;  %p1013_p1 = scmp.lt.s32.totalorder %s1005_s8, %s1005_s8 }
 0x445   : > { %p1007_p12 = pnand %p1006_p11, %p1178_p10  ;;  %p1014_p2 = por %p1013_p1, %p1012_p0 }
 0x447   : > { %p1008_p13 = pneg %p1007_p12 }
 0x449   : > { %p1015_p3 = pnand %p1014_p2, %p1008_p13 }
 0x44b   : > { %1018 = shalt.err (!%p1015_p3)
}
 0x44c   : > { %s1019_s21 = scalar_lea.hbm %s1218_s5, 256 }
 0x44d   : > { %p1020_p4 = scmp.ne.s32.totalorder %s1218_s5, %s1019_s21  ;;  %p1025_p7 = scmp.lt.u32.totalorder %s1019_s21, %s1218_s5 }
 0x44f   : > { %p1021_p5 = pnand %p1020_p4, %p1178_p10 }
 0x451   : > { %p1022_p6 = pneg %p1021_p5 }
 0x453   : > { %p1027_p8 = pnand %p1025_p7, %p1022_p6 }
 0x455   : > { %1030 = shalt.err (!%p1027_p8)
}
 0x456   : > { %s1070_s13 = smov 128   ;;  %s1071_s18 = smov 8  }
 0x457   : > { %963 = dma.vmem_to_hbm [thread:$0]  (%p1178_p10), %s813_s6, 256, %s1218_s5, [#allocation5], %s1070_s13, %s1070_s13, %s1071_s18  }
 0x458   : > { %1044 = dma.done.wait (%p1178_p10), [#allocation5], 256  }
 0x459   : > { %1046 = vsyncadd (%p1178_p10), [#allocation5], 4294967040 }
 0x45a PF: > { %s16_s20 = sadd.s32 1, %s1057_s20   ;;  %s1220_s18 = smov %s1053_s19 }
 0x45b   : > { %p13_p9 = scmp.ge.s32.totalorder %s16_s20, 5   ;;  %s1221_s19 = smov %s1223_s22 }
 0x45d   :  { %15 = sbr.rel (!%p13_p9) target bundleno = 2 (0x2), region = 92 }
 0x464   :  { %828 = vsyncpa [#allocation5], 1 }
 0x465   :  { %830 = vsyncpa [#allocation5 + $0x1], 1 }

</bundles_post_ra>
